<compile_context>
chip_gen: v7x
topology: tpu7x:2x2x1
jax: 0.10.0
libtpu: 0.0.40
codegen_flags: <defaults>
</compile_context>

<pallas_src>
import jax
import jax.numpy as jnp
import numpy as np
from jax.experimental import pallas as pl
from jax.experimental.pallas import tpu as pltpu

# ----------------------------- configuration --------------------------------
PHM_DIM = 4            # args.hypercomplex_division
PHM_INIT_RANGE = 0.01  # args.phm_init_range
HIDDEN = 512           # hidden size of the wrapped model (divisible by PHM_DIM)
D_BLK = HIDDEN // PHM_DIM  # 128 -> lane aligned


# ------------------------------- Pallas kernel -------------------------------
def phm_linear_kernel(x_ref, w_ref, b_ref, mask_ref, o_ref):
    """y = (x @ W + b) * mask  — one full-width MXU dot per row tile.

    x_ref   : VMEM (TM, HIDDEN)   bf16
    w_ref   : VMEM (HIDDEN, HIDDEN) bf16   (constant across grid -> fetched once)
    b_ref   : VMEM (1, HIDDEN)    f32
    mask_ref: VMEM (TM, 1)        f32
    o_ref   : VMEM (TM, HIDDEN)   f32
    """
    y = jnp.dot(x_ref[...], w_ref[...], preferred_element_type=jnp.float32)
    # Bias add + mask broadcast in f32 over the full lane-dense tile, one store.
    o_ref[...] = (y + b_ref[...]) * mask_ref[...]


def _round_up(x, m):
    return (x + m - 1) // m * m


def _choose_tm(m):
    """Largest row tile <=512 that still leaves >=2 grid steps (megacore)."""
    for tm in (512, 256, 128, 64, 32, 16, 8):
        if m >= 2 * tm:
            return tm
    return _round_up(m, 8)


def phm_linear(x2, mask2, phm_rule, wb, bias):
    """x2: (M, HIDDEN) f32, mask2: (M, 1) -> (M, HIDDEN) f32."""
    M, H = x2.shape
    assert H == HIDDEN

    # Materialize W = sum_i kron(phm_rule[i], wb[i]) once per call (1 MiB f32),
    # amortized over the whole row grid.
    # W[j*D+a, k*D+c] = sum_i phm[i,j,k] * wb[i,a,c]
    W = jnp.einsum("ijk,iac->jakc", phm_rule, wb).reshape(H, H)

    tm = _choose_tm(M)
    m_pad = _round_up(M, tm)
    pad = m_pad - M
    x_p = jnp.pad(x2, ((0, pad), (0, 0))).astype(jnp.bfloat16)
    mask_p = jnp.pad(mask2, ((0, pad), (0, 0))).astype(jnp.float32)

    out = pl.pallas_call(
        phm_linear_kernel,
        out_shape=jax.ShapeDtypeStruct((m_pad, H), jnp.float32),
        grid=(m_pad // tm,),
        in_specs=[
            pl.BlockSpec((tm, H), lambda i: (i, 0)),   # x   (bf16, tiled rows)
            pl.BlockSpec((H, H), lambda i: (0, 0)),    # W   (bf16, constant block)
            pl.BlockSpec((1, H), lambda i: (0, 0)),    # bias (f32, constant block)
            pl.BlockSpec((tm, 1), lambda i: (i, 0)),   # mask (f32, tiled rows)
        ],
        out_specs=pl.BlockSpec((tm, H), lambda i: (i, 0)),
        compiler_params=pltpu.CompilerParams(
            dimension_semantics=("parallel",)),
    )(x_p, W.astype(jnp.bfloat16), bias.reshape(1, H).astype(jnp.float32), mask_p)
    return out[:M]


# ------------------------------ model wrapper --------------------------------
@jax.jit
def compacter_forward(sample_items, log_mask, params):
    """Synthetic CompacterModel forward.

    sample_items: (B, S) int32 item ids
    log_mask:     (B, S) {0,1}
    """
    # TODO(synk): the original wrapped backbone (`self.model(sample_items,
    # log_mask, local_rank)`) is unspecified; only the Compacter/PHMLinear
    # compute path (embedding lookup -> PHM linear -> mask) is modeled.
    # TODO(synk): the embedding gather stays in XLA under the same jit; a fully
    # fused in-kernel DMA gather would cut activation HBM traffic further.
    item_emb = params["item_emb"]                    # (V, HIDDEN)
    x = item_emb[sample_items].astype(jnp.float32)   # (B, S, HIDDEN)  (glue)
    B, S, H = x.shape
    x2 = x.reshape(B * S, H)
    mask2 = log_mask.reshape(B * S, 1).astype(jnp.float32)
    y2 = phm_linear(x2, mask2, params["phm_rule"], params["wb"], params["bias"])
    return y2.reshape(B, S, H)


def init_params(key, vocab):
    k1, k2, k3, k4 = jax.random.split(key, 4)
    phm_rule = PHM_INIT_RANGE * jax.random.normal(
        k1, (PHM_DIM, PHM_DIM, PHM_DIM), jnp.float32)      # phm_rule.data.normal_
    wb = 0.05 * jax.random.normal(k2, (PHM_DIM, D_BLK, D_BLK), jnp.float32)
    bias = 0.01 * jax.random.normal(k3, (HIDDEN,), jnp.float32)
    item_emb = jax.random.normal(k4, (vocab, HIDDEN), jnp.float32)
    return {"phm_rule": phm_rule, "wb": wb, "bias": bias, "item_emb": item_emb}


def reference_forward(sample_items, log_mask, params):
    """Pure-JAX f32 reference: materialize W = sum_i kron(phm[i], Wb[i])."""
    phm, wb, bias = params["phm_rule"], params["wb"], params["bias"]
    W = sum(jnp.kron(phm[i], wb[i]) for i in range(PHM_DIM))   # (HIDDEN, HIDDEN)
    x = params["item_emb"][sample_items].astype(jnp.float32)   # (B, S, H)
    y = jnp.einsum("bsh,hk->bsk", x, W) + bias
    return y * log_mask[..., None].astype(jnp.float32)


# ----------------------------------- main ------------------------------------
if __name__ == "__main__":
    B, S, VOCAB = 2, 8, 100
    key = jax.random.PRNGKey(0)
    kp, ki, km = jax.random.split(key, 3)

    params = init_params(kp, VOCAB)
    sample_items = jax.random.randint(ki, (B, S), 0, VOCAB, dtype=jnp.int32)
    log_mask = (jax.random.uniform(km, (B, S)) > 0.3).astype(jnp.int32)

    out = compacter_forward(sample_items, log_mask, params)
    out = jax.block_until_ready(out)

    ref = reference_forward(sample_items, log_mask, params)
    np.testing.assert_allclose(np.asarray(out), np.asarray(ref),
                               rtol=2e-2, atol=2e-3)
    print("KERNEL_OK")
</pallas_src>

<mosaic_0001>
module attributes {stable_mosaic.version = 11 : i64} {
  func.func @phm_linear_kernel(%arg0: i32, %arg1: memref<8x512xbf16, #tpu.memory_space<vmem>>, %arg2: memref<512x512xbf16, #tpu.memory_space<vmem>>, %arg3: memref<1x512xf32, #tpu.memory_space<vmem>>, %arg4: memref<8x1xf32, #tpu.memory_space<vmem>>, %arg5: memref<8x512xf32, #tpu.memory_space<vmem>>) attributes {dimension_semantics = [#tpu.dimension_semantics<parallel>], iteration_bounds = array<i64: 2>, scalar_prefetch = 0 : i64, scratch_operands = 0 : i64, tpu.core_type = #tpu.core_type<tc>, window_params = [{transform_indices = @transform_0, window_bounds = array<i64: 8, 512>}, {pipeline_mode = #tpu.pipeline_mode<synchronous>, transform_indices = @transform_1, window_bounds = array<i64: 512, 512>}, {pipeline_mode = #tpu.pipeline_mode<synchronous>, transform_indices = @transform_2, window_bounds = array<i64: 1, 512>}, {transform_indices = @transform_3, window_bounds = array<i64: 8, 1>}, {transform_indices = @transform_4, window_bounds = array<i64: 8, 512>}]} {
    %c0 = arith.constant 0 : index
    %c0_0 = arith.constant 0 : index
    %0 = vector.load %arg1[%c0, %c0_0] : memref<8x512xbf16, #tpu.memory_space<vmem>>, vector<8x512xbf16>
    %c0_1 = arith.constant 0 : index
    %c0_2 = arith.constant 0 : index
    %1 = vector.load %arg2[%c0_1, %c0_2] : memref<512x512xbf16, #tpu.memory_space<vmem>>, vector<512x512xbf16>
    %cst = arith.constant dense<0.000000e+00> : vector<8x512xf32>
    %2 = tpu.matmul %0, %1, %cst {dimension_numbers = #tpu.dot_dimension_numbers<[1], [0], [0], [1], [0, 0, 1, 1], [], []>} : vector<8x512xbf16>, vector<512x512xbf16>, vector<8x512xf32> -> vector<8x512xf32>
    %c0_3 = arith.constant 0 : index
    %c0_4 = arith.constant 0 : index
    %3 = vector.load %arg3[%c0_3, %c0_4] : memref<1x512xf32, #tpu.memory_space<vmem>>, vector<1x512xf32>
    %4 = vector.broadcast %3 : vector<1x512xf32> to vector<8x512xf32>
    %5 = arith.addf %2, %4 : vector<8x512xf32>
    %c0_5 = arith.constant 0 : index
    %c0_6 = arith.constant 0 : index
    %6 = vector.load %arg4[%c0_5, %c0_6] : memref<8x1xf32, #tpu.memory_space<vmem>>, vector<8x1xf32>
    %7 = vector.broadcast %6 : vector<8x1xf32> to vector<8x512xf32>
    %8 = arith.mulf %5, %7 : vector<8x512xf32>
    %c0_7 = arith.constant 0 : index
    %c0_8 = arith.constant 0 : index
    %9 = vector.load %arg5[%c0_7, %c0_8] : memref<8x512xf32, #tpu.memory_space<vmem>>, vector<8x512xf32>
    tpu.vector_store %arg5[%c0_7, %c0_8], %8 {strides = array<i32>} : memref<8x512xf32, #tpu.memory_space<vmem>>, vector<8x512xf32>,
    return
  }
  func.func @transform_0(%arg0: i32) -> (i32, i32) {
    %c0_i32 = arith.constant 0 : i32
    %c0_i32_0 = arith.constant 0 : i32
    return %arg0, %c0_i32 : i32, i32
  }
  func.func @transform_1(%arg0: i32) -> (i32, i32) {
    %c0_i32 = arith.constant 0 : i32
    %c0_i32_0 = arith.constant 0 : i32
    %c0_i32_1 = arith.constant 0 : i32
    return %c0_i32, %c0_i32_0 : i32, i32
  }
  func.func @transform_2(%arg0: i32) -> (i32, i32) {
    %c0_i32 = arith.constant 0 : i32
    %c0_i32_0 = arith.constant 0 : i32
    %c0_i32_1 = arith.constant 0 : i32
    return %c0_i32, %c0_i32_0 : i32, i32
  }
  func.func @transform_3(%arg0: i32) -> (i32, i32) {
    %c0_i32 = arith.constant 0 : i32
    %c0_i32_0 = arith.constant 0 : i32
    return %arg0, %c0_i32 : i32, i32
  }
  func.func @transform_4(%arg0: i32) -> (i32, i32) {
    %c0_i32 = arith.constant 0 : i32
    %c0_i32_0 = arith.constant 0 : i32
    return %arg0, %c0_i32 : i32, i32
  }
}

</mosaic_0001>

<bundles_post_ra>
// kernel: compacter_forward.1
= control target key start
LH: loop header
LB: loop body
LE: loop exit
PB: predicated region body
PF: predicated region fallthrough
CT: control target
= control target key end

     0   :  { %9 = vsyncpa [#allocation3], 0  ;;  %s2278_s0 = inlined_call_operand.vmem [shape: bf16[16,512], index: 0, kind: input, shape index: {}]   ;;  %s2279_s1 = inlined_call_operand.vmem [shape: bf16[512,512], index: 1, kind: input, shape index: {}]   ;;  %s2280_s2 = inlined_call_operand.vmem [shape: f32[1,512], index: 2, kind: input, shape index: {}]   ;;  %s2281_s3 = inlined_call_operand.vmem [shape: f32[16,1], index: 3, kind: input, shape index: {}]   ;;  %s2282_s4 = inlined_call_operand.hbm [shape: f32[16,512], index: 4, kind: output, shape index: {}]  }
   0x1   :  { %11 = vsyncpa [#allocation3 + $0x1], 0  ;;  %s1770_s15 = smov 0   ;;  %s1772_s16 = smov 0  }
   0x2   :  { %s1774_s17 = smov 0   ;;  %s1776_s18 = smov 0  }
   0x3 LB: > { %s1791_s19 = sadd.s32 4294967295, %s1741_s18   ;;  %s1283_s20 = sadd.s32 4294967294, %s1741_s18   ;;  %s1741_s18 = sphi %s1776_s18, %s2288_s18   ;;  %s1737_s17 = sphi %s1774_s17, %s2287_s17   ;;  %s1733_s16 = sphi %s1772_s16, %s2286_s16   ;;  %s1729_s15 = sphi %s1770_s15, %s2285_s15  }
   0x4   : > { %s1795_s21 = sadd.s32 1, %s1741_s18   ;;  %s118_s22 = sadd.s32 1, %s1737_s17 }
   0x5   : > { %s115_s23 = ssub.s32 %s1741_s18, %s1795_s21  ;;  %p128_p0 = scmp.ne.s32.totalorder %s1737_s17, %s1733_s16 }
   0x6   : > { %p116_p1 = scmp.eq.s32.totalorder %s115_s23, 0  ;;  %p129_p2 = scmp.eq.s32.totalorder %s1791_s19, 1 }
   0x7   : > { %p134_p3 = scmp.ne.s32.totalorder %s1733_s16, %s1729_s15  ;;  %p135_p4 = scmp.eq.s32.totalorder %s1283_s20, 1 }
   0x8   : > { %s1806_s24 = scalar_select %p116_p1, %s1737_s17, %s118_s22  }
   0x9   : > { %p1808_p5 = por %p129_p2, %p128_p0  ;;  %p1812_p6 = por %p135_p4, %p134_p3 }
   0xa   : > { %p1286_p7 = scmp.ge.s32.totalorder %s1741_s18, 1  ;;  %p174_p8 = scmp.lt.s32.totalorder %s1741_s18, 3 }
   0xc   : > { %p175_p9 = pnand %p1286_p7, %p174_p8 }
   0xd   : > { %v1483_v0 = vld [vmem:[%s2279_s1 + $0x4] ss:$16 sps:$4 sm:$0xff] (!%p175_p9)   ;;  %v1485_v1 = vld [vmem:[%s2279_s1 + $0xc] ss:$16 sps:$4 sm:$0xff] (!%p175_p9)   ;;  %v1487_v2 = vld [vmem:[%s2279_s1] ss:$16 sps:$4 sm:$0xff] (!%p175_p9)  }
   0xe   : > { %178 = sbr.rel (%p175_p9) target bundleno = 373 (0x175), region = 36  ;;  %1019 = vmatprep.subr.bf16.mxu0 (!%p175_p9), %v1483_v0  ;;  %v1488_v3 = vld [vmem:[%s2279_s1 + $0x8] ss:$16 sps:$4 sm:$0xff] (!%p175_p9)   ;;  %1101 = vmatprep.subr.bf16.mxu1 (!%p175_p9), %v1485_v1  ;;  %v1489_v4 = vld [vmem:[%s2279_s1 + $0x24] ss:$16 sps:$4 sm:$0xff] (!%p175_p9)   ;;  %v1743_v8 = vmov (!%p175_p9), 0  }
   0xf   : > { %1020 = vmatpush1.bf16.msra.mxu0 (!%p175_p9), %v1487_v2  ;;  %1102 = vmatpush1.bf16.msra.mxu1 (!%p175_p9), %v1488_v3  ;;  %v1491_v5 = vld [vmem:[%s2279_s1 + $0x2c] ss:$16 sps:$4 sm:$0xff] (!%p175_p9)   ;;  %v1493_v6 = vld [vmem:[%s2279_s1 + $0x20] ss:$16 sps:$4 sm:$0xff] (!%p175_p9)   ;;  %v1494_v7 = vld [vmem:[%s2279_s1 + $0x28] ss:$16 sps:$4 sm:$0xff] (!%p175_p9)  }
  0x10   : > { %1021 = vmatprep.subr.bf16.mxu0 (!%p175_p9), %v1489_v4  ;;  %1482 = vset.pattern.permute.xlu0 (!%p175_p9), %v1743_v8  ;;  %v1495_v9 = vld [vmem:[%s2279_s1 + $0x44] ss:$16 sps:$4 sm:$0xff] (!%p175_p9)   ;;  %v1497_v10 = vld [vmem:[%s2279_s1 + $0x4c] ss:$16 sps:$4 sm:$0xff] (!%p175_p9)   ;;  %v1499_v11 = vld [vmem:[%s2279_s1 + $0x40] ss:$16 sps:$4 sm:$0xff] (!%p175_p9)  }
  0x11   : > { %1103 = vmatprep.subr.bf16.mxu1 (!%p175_p9), %v1491_v5  ;;  %v1500_v12 = vld [vmem:[%s2279_s1 + $0x48] ss:$16 sps:$4 sm:$0xff] (!%p175_p9)   ;;  %v1501_v13 = vld [vmem:[%s2279_s1 + $0x64] ss:$16 sps:$4 sm:$0xff] (!%p175_p9)   ;;  %v1503_v14 = vld [vmem:[%s2279_s1 + $0x6c] ss:$16 sps:$4 sm:$0xff] (!%p175_p9)  }
  0x12   : > { %v1505_v15 = vld [vmem:[%s2279_s1 + $0x60] ss:$16 sps:$4 sm:$0xff] (!%p175_p9)   ;;  %v1506_v16 = vld [vmem:[%s2279_s1 + $0x68] ss:$16 sps:$4 sm:$0xff] (!%p175_p9)   ;;  %v1507_v17 = vld [vmem:[%s2279_s1 + $0x84] ss:$16 sps:$4 sm:$0xff] (!%p175_p9)  }
  0x13   : > { %1022 = vmatpush1.bf16.msra.mxu0 (!%p175_p9), %v1493_v6  ;;  %1104 = vmatpush1.bf16.msra.mxu1 (!%p175_p9), %v1494_v7  ;;  %v1509_v18 = vld [vmem:[%s2279_s1 + $0x8c] ss:$16 sps:$4 sm:$0xff] (!%p175_p9)   ;;  %v1511_v19 = vld [vmem:[%s2279_s1 + $0x80] ss:$16 sps:$4 sm:$0xff] (!%p175_p9)   ;;  %v1512_v20 = vld [vmem:[%s2279_s1 + $0x88] ss:$16 sps:$4 sm:$0xff] (!%p175_p9)  }
  0x14   : > { %1023 = vmatprep.subr.bf16.mxu0 (!%p175_p9), %v1495_v9  ;;  %1105 = vmatprep.subr.bf16.mxu1 (!%p175_p9), %v1497_v10  ;;  %v1513_v21 = vld [vmem:[%s2279_s1 + $0xa4] ss:$16 sps:$4 sm:$0xff] (!%p175_p9)   ;;  %v1515_v22 = vld [vmem:[%s2279_s1 + $0xac] ss:$16 sps:$4 sm:$0xff] (!%p175_p9)   ;;  %v1517_v23 = vld [vmem:[%s2279_s1 + $0xa0] ss:$16 sps:$4 sm:$0xff] (!%p175_p9)  }
  0x15   : > { %v1518_v24 = vld [vmem:[%s2279_s1 + $0xa8] ss:$16 sps:$4 sm:$0xff]   ;;  %v1519_v25 = vld [vmem:[%s2279_s1 + $0xc4] ss:$16 sps:$4 sm:$0xff]   ;;  %v1521_v26 = vld [vmem:[%s2279_s1 + $0xcc] ss:$16 sps:$4 sm:$0xff]  }
  0x16   : > { %v1523_v27 = vld [vmem:[%s2279_s1 + $0xc0] ss:$16 sps:$4 sm:$0xff]   ;;  %v1524_v28 = vld [vmem:[%s2279_s1 + $0xc8] ss:$16 sps:$4 sm:$0xff]   ;;  %v1525_v29 = vld [vmem:[%s2279_s1 + $0xe4] ss:$16 sps:$4 sm:$0xff]  }
  0x17   : > { %1024 = vmatpush1.bf16.msra.mxu0 %v1499_v11  ;;  %1106 = vmatpush1.bf16.msra.mxu1 %v1500_v12  ;;  %v1527_v30 = vld [vmem:[%s2279_s1 + $0xec] ss:$16 sps:$4 sm:$0xff]   ;;  %v1529_v31 = vld [vmem:[%s2279_s1 + $0xe0] ss:$16 sps:$4 sm:$0xff]   ;;  %v1530_v32 = vld [vmem:[%s2279_s1 + $0xe8] ss:$16 sps:$4 sm:$0xff]  }
  0x18   : > { %1025 = vmatprep.subr.bf16.mxu0 %v1501_v13  ;;  %1107 = vmatprep.subr.bf16.mxu1 %v1503_v14  ;;  %v1531_v33 = vld [vmem:[%s2279_s1 + $0x104] ss:$16 sps:$4 sm:$0xff]   ;;  %p204_p10 = scmp.lt.s32.totalorder %s1791_s19, 1  ;;  %v1533_v34 = vld [vmem:[%s2279_s1 + $0x10c] ss:$16 sps:$4 sm:$0xff]   ;;  %s1429_s5 = sshll.u32 %s1791_s19, 9 }
  0x19   : > { %v1535_v35 = vld [vmem:[%s2279_s1 + $0x100] ss:$16 sps:$4 sm:$0xff]   ;;  %v1536_v36 = vld [vmem:[%s2279_s1 + $0x108] ss:$16 sps:$4 sm:$0xff]   ;;  %v1537_v37 = vld [vmem:[%s2279_s1 + $0x124] ss:$16 sps:$4 sm:$0xff]   ;;  %s2234_s12 = scalar_lea.hbm %s2282_s4, %s1429_s5 }
  0x1a   : > { %s1931_s7 = scalar_select %p204_p10, %s1791_s19, 1  ;;  %v1539_v38 = vld [vmem:[%s2279_s1 + $0x12c] ss:$16 sps:$4 sm:$0xff]   ;;  %v1541_v39 = vld [vmem:[%s2279_s1 + $0x120] ss:$16 sps:$4 sm:$0xff]  }
  0x1b   : > { %1026 = vmatpush1.bf16.msra.mxu0 %v1505_v15  ;;  %1108 = vmatpush1.bf16.msra.mxu1 %v1506_v16  ;;  %v1542_v40 = vld [vmem:[%s2279_s1 + $0x128] ss:$16 sps:$4 sm:$0xff]   ;;  %v1543_v41 = vld [vmem:[%s2279_s1 + $0x144] ss:$16 sps:$4 sm:$0xff]   ;;  %v1545_v42 = vld [vmem:[%s2279_s1 + $0x14c] ss:$16 sps:$4 sm:$0xff]  }
  0x1c   : > { %1027 = vmatprep.subr.bf16.mxu0 %v1507_v17  ;;  %1109 = vmatprep.subr.bf16.mxu1 %v1509_v18  ;;  %s1428_s22 = sshll.u32 %s1931_s7, 4  ;;  %v1547_v43 = vld [vmem:[%s2279_s1 + $0x140] ss:$16 sps:$4 sm:$0xff]   ;;  %v1548_v44 = vld [vmem:[%s2279_s1 + $0x148] ss:$16 sps:$4 sm:$0xff]   ;;  %s1290_s13 = sshll.u32 %s1931_s7, 3 }
  0x1d   : > { %s1958_s9 = scalar_lea.vmem %s2278_s0, %s1428_s22  ;;  %v1549_v45 = vld [vmem:[%s2279_s1 + $0x164] ss:$16 sps:$4 sm:$0xff]   ;;  %v1551_v46 = vld [vmem:[%s2279_s1 + $0x16c] ss:$16 sps:$4 sm:$0xff]   ;;  %v1553_v49 = vld [vmem:[%s2279_s1 + $0x160] ss:$16 sps:$4 sm:$0xff]   ;;  %s212_s28 = scalar_lea.vmem %s2281_s3, %s1290_s13 }
  0x1e   : > { %v213_v47 = vld [vmem:[%s1958_s9] sm:$0xff]  ;;  %v1554_v50 = vld [vmem:[%s2279_s1 + $0x168] ss:$16 sps:$4 sm:$0xff]   ;;  %v1557_v52 = vld [vmem:[%s2279_s1 + $0x18c] ss:$16 sps:$4 sm:$0xff]   ;;  %s1744_s14 = smov [#allocation2]  }
  0x1f   : > { %1028 = vmatpush1.bf16.msra.mxu0 %v1511_v19  ;;  %1110 = vmatpush1.bf16.msra.mxu1 %v1512_v20  ;;  %v1292_v48 = vcombine.high %v213_v47, %v213_v47  ;;  %v1555_v51 = vld [vmem:[%s2279_s1 + $0x184] ss:$16 sps:$4 sm:$0xff]   ;;  %v1559_v53 = vld [vmem:[%s2279_s1 + $0x180] ss:$16 sps:$4 sm:$0xff]   ;;  %v1560_v54 = vld [vmem:[%s2279_s1 + $0x188] ss:$16 sps:$4 sm:$0xff]   ;;  %v1291_v6 = vcombine.low %v213_v47, %v213_v47 }
  0x20   : > { %1029 = vmatprep.subr.bf16.mxu0 %v1513_v21  ;;  %1111 = vmatprep.subr.bf16.mxu1 %v1515_v22  ;;  %v1561_v55 = vld [vmem:[%s2279_s1 + $0x1a4] ss:$16 sps:$4 sm:$0xff]   ;;  %v1563_v56 = vld [vmem:[%s2279_s1 + $0x1ac] ss:$16 sps:$4 sm:$0xff]   ;;  %v1565_v57 = vld [vmem:[%s2279_s1 + $0x1a0] ss:$16 sps:$4 sm:$0xff]  }
  0x21   : > { %1051 = vmatprep.mubr.bf16.mxu0 %v1292_v48  ;;  %1133 = vmatprep.mubr.bf16.mxu1 %v1292_v48  ;;  %v1566_v58 = vld [vmem:[%s2279_s1 + $0x1a8] ss:$16 sps:$4 sm:$0xff]   ;;  %v1567_v59 = vld [vmem:[%s2279_s1 + $0x1c4] ss:$16 sps:$4 sm:$0xff]   ;;  %v1569_v60 = vld [vmem:[%s2279_s1 + $0x1cc] ss:$16 sps:$4 sm:$0xff]  }
  0x22   : > { %v1571_v61 = vld [vmem:[%s2279_s1 + $0x1c0] ss:$16 sps:$4 sm:$0xff]   ;;  %v1572_v62 = vld [vmem:[%s2279_s1 + $0x1c8] ss:$16 sps:$4 sm:$0xff]   ;;  %v1573_v63 = vld [vmem:[%s2279_s1 + $0x1e4] ss:$16 sps:$4 sm:$0xff]  }
  0x23   : > { %1030 = vmatpush1.bf16.msra.mxu0 %v1517_v23  ;;  %1112 = vmatpush1.bf16.msra.mxu1 %v1518_v24  ;;  %v1575_v0 = vld [vmem:[%s2279_s1 + $0x1ec] ss:$16 sps:$4 sm:$0xff]   ;;  %v1577_v1 = vld [vmem:[%s2279_s1 + $0x1e0] ss:$16 sps:$4 sm:$0xff]   ;;  %v1578_v2 = vld [vmem:[%s2279_s1 + $0x1e8] ss:$16 sps:$4 sm:$0xff]  }
  0x24   : > { %1031 = vmatprep.subr.bf16.mxu0 %v1519_v25  ;;  %1113 = vmatprep.subr.bf16.mxu1 %v1521_v26  ;;  %v1584_v3 = vld [vmem:[%s2279_s1 + $0x204] ss:$16 sps:$4 sm:$0xff]   ;;  %v1587_v4 = vld [vmem:[%s2279_s1 + $0x20c] ss:$16 sps:$4 sm:$0xff]   ;;  %v1582_v7 = vld [vmem:[%s2279_s1 + $0x200] ss:$16 sps:$4 sm:$0xff]  }
  0x25   : > { %v2028_v5 = vld [vmem:[%s1958_s9 + $0x8] sm:$0xff]  ;;  %v1590_v9 = vld [vmem:[%s2279_s1 + $0x224] ss:$16 sps:$4 sm:$0xff]   ;;  %v1588_v12 = vld [vmem:[%s2279_s1 + $0x220] ss:$16 sps:$4 sm:$0xff]   ;;  %s1683_s20 = sshll.u32 %s1744_s14, 4  ;;  %s1684_s20 = int_to_ptr.vmem [resolvable:$false] %s1683_s20 }
  0x26   : > { %v1585_v8 = vld [vmem:[%s2279_s1 + $0x208] ss:$16 sps:$4 sm:$0xff]   ;;  %v1593_v10 = vld [vmem:[%s2279_s1 + $0x22c] ss:$16 sps:$4 sm:$0xff]   ;;  %v1294_v11 = vcombine.high %v2028_v5, %v2028_v5  ;;  %v1596_v14 = vld [vmem:[%s2279_s1 + $0x244] ss:$16 sps:$4 sm:$0xff]  }
  0x27   : > { %1032 = vmatpush1.bf16.msra.mxu0 %v1523_v27  ;;  %1114 = vmatpush1.bf16.msra.mxu1 %v1524_v28  ;;  %v1591_v13 = vld [vmem:[%s2279_s1 + $0x228] ss:$16 sps:$4 sm:$0xff]   ;;  %v1599_v15 = vld [vmem:[%s2279_s1 + $0x24c] ss:$16 sps:$4 sm:$0xff]   ;;  %v1594_v16 = vld [vmem:[%s2279_s1 + $0x240] ss:$16 sps:$4 sm:$0xff]  }
  0x28   : > { %1033 = vmatprep.subr.bf16.mxu0 %v1525_v29  ;;  %1115 = vmatprep.subr.bf16.mxu1 %v1527_v30  ;;  %v1597_v17 = vld [vmem:[%s2279_s1 + $0x248] ss:$16 sps:$4 sm:$0xff]   ;;  %v1602_v18 = vld [vmem:[%s2279_s1 + $0x264] ss:$16 sps:$4 sm:$0xff]   ;;  %v1605_v19 = vld [vmem:[%s2279_s1 + $0x26c] ss:$16 sps:$4 sm:$0xff]  }
  0x29   : > { %v1600_v20 = vld [vmem:[%s2279_s1 + $0x260] ss:$16 sps:$4 sm:$0xff]   ;;  %v1603_v21 = vld [vmem:[%s2279_s1 + $0x268] ss:$16 sps:$4 sm:$0xff]   ;;  %v1608_v22 = vld [vmem:[%s2279_s1 + $0x284] ss:$16 sps:$4 sm:$0xff]  }
  0x2a   : > { %v1611_v23 = vld [vmem:[%s2279_s1 + $0x28c] ss:$16 sps:$4 sm:$0xff]   ;;  %v1606_v24 = vld [vmem:[%s2279_s1 + $0x280] ss:$16 sps:$4 sm:$0xff]   ;;  %v1609_v25 = vld [vmem:[%s2279_s1 + $0x288] ss:$16 sps:$4 sm:$0xff]  }
  0x2b   : > { %1034 = vmatpush1.bf16.msra.mxu0 %v1529_v31  ;;  %1116 = vmatpush1.bf16.msra.mxu1 %v1530_v32  ;;  %v1614_v26 = vld [vmem:[%s2279_s1 + $0x2a4] ss:$16 sps:$4 sm:$0xff]   ;;  %v1617_v27 = vld [vmem:[%s2279_s1 + $0x2ac] ss:$16 sps:$4 sm:$0xff]   ;;  %v1612_v28 = vld [vmem:[%s2279_s1 + $0x2a0] ss:$16 sps:$4 sm:$0xff]  }
  0x2c   : > { %1035 = vmatprep.subr.bf16.mxu0 %v1531_v33  ;;  %1117 = vmatprep.subr.bf16.mxu1 %v1533_v34  ;;  %v1615_v29 = vld [vmem:[%s2279_s1 + $0x2a8] ss:$16 sps:$4 sm:$0xff]   ;;  %v1620_v30 = vld [vmem:[%s2279_s1 + $0x2c4] ss:$16 sps:$4 sm:$0xff]   ;;  %v1623_v31 = vld [vmem:[%s2279_s1 + $0x2cc] ss:$16 sps:$4 sm:$0xff]  }
  0x2d   : > { %v1183_v32 = vld [vmem:[%s212_s28] sm:$0xff]  ;;  %v1621_v34 = vld [vmem:[%s2279_s1 + $0x2c8] ss:$16 sps:$4 sm:$0xff]   ;;  %v1647_v48 = vld [vmem:[%s2279_s1 + $0x34c] ss:$16 sps:$4 sm:$0xff]   ;;  %s201_s28 = sand.u32 1, %s1733_s16  }
  0x2e   : > { %1186 = vperm.xlu0 %1482, %v1183_v32   ;;  %v1618_v33 = vld [vmem:[%s2279_s1 + $0x2c0] ss:$16 sps:$4 sm:$0xff]   ;;  %v1644_v47 = vld [vmem:[%s2279_s1 + $0x344] ss:$16 sps:$4 sm:$0xff]   ;;  %s1287_s7 = sshll.u32 %s201_s28, 5  ;;  %s1198_s19 = scalar_lea.sflag [#allocation3], %s201_s28 }
  0x2f   : > { %1036 = vmatpush1.bf16.msra.mxu0 %v1535_v35  ;;  %1118 = vmatpush1.bf16.msra.mxu1 %v1536_v36  ;;  %v1626_v35 = vld [vmem:[%s2279_s1 + $0x2e4] ss:$16 sps:$4 sm:$0xff]   ;;  %v1629_v36 = vld [vmem:[%s2279_s1 + $0x2ec] ss:$16 sps:$4 sm:$0xff]   ;;  %s203_s6 = scalar_lea.vmem [#allocation2], %s1287_s7  ;;  %s1685_s9 = scalar_lea.vmem %s1684_s20, 1024 }
  0x30   : > { %1037 = vmatprep.subr.bf16.mxu0 %v1537_v37  ;;  %1119 = vmatprep.subr.bf16.mxu1 %v1539_v38  ;;  %v1624_v37 = vld [vmem:[%s2279_s1 + $0x2e0] ss:$16 sps:$4 sm:$0xff]   ;;  %v1627_v38 = vld [vmem:[%s2279_s1 + $0x2e8] ss:$16 sps:$4 sm:$0xff]   ;;  %s1212_s8 = sshll.u32 %s203_s6, 4  ;;  %s2236_s8 = int_to_ptr.vmem [resolvable:$true] %s1212_s8 }
  0x31   : > { %s1679_s13 = scalar_lea.vmem %s2236_s8, 512  ;;  %p1686_p0 = scmp.lt.s32.totalorder %s2236_s8, %s1684_s20 }
  0x32   : > { %p1680_p11 = scmp.ne.s32.totalorder %s2236_s8, %s1679_s13  ;;  %p1687_p1 = scmp.lt.s32.totalorder %s1685_s9, %s1679_s13 }
  0x33   : > { %1038 = vmatpush1.bf16.msra.mxu0 %v1541_v39  ;;  %1120 = vmatpush1.bf16.msra.mxu1 %v1542_v40  ;;  %v1632_v39 = vld [vmem:[%s2279_s1 + $0x304] ss:$16 sps:$4 sm:$0xff]   ;;  %v1635_v40 = vld [vmem:[%s2279_s1 + $0x30c] ss:$16 sps:$4 sm:$0xff]  }
  0x34   : > { %1039 = vmatprep.subr.bf16.mxu0 %v1543_v41  ;;  %1121 = vmatprep.subr.bf16.mxu1 %v1545_v42  ;;  %v1630_v41 = vld [vmem:[%s2279_s1 + $0x300] ss:$16 sps:$4 sm:$0xff]   ;;  %v1633_v42 = vld [vmem:[%s2279_s1 + $0x308] ss:$16 sps:$4 sm:$0xff]   ;;  %p1681_p12 = pnand %p1680_p11, %p1808_p5  ;;  %p1688_p2 = por %p1687_p1, %p1686_p0 }
  0x36   : > { %p1682_p13 = pneg %p1681_p12 }
  0x37   : > { %1040 = vmatpush1.bf16.msra.mxu0 %v1547_v43  ;;  %1122 = vmatpush1.bf16.msra.mxu1 %v1548_v44  ;;  %v1638_v43 = vld [vmem:[%s2279_s1 + $0x324] ss:$16 sps:$4 sm:$0xff]   ;;  %v1641_v44 = vld [vmem:[%s2279_s1 + $0x32c] ss:$16 sps:$4 sm:$0xff]  }
  0x38   : > { %1041 = vmatprep.subr.bf16.mxu0 %v1549_v45  ;;  %1123 = vmatprep.subr.bf16.mxu1 %v1551_v46  ;;  %v1636_v45 = vld [vmem:[%s2279_s1 + $0x320] ss:$16 sps:$4 sm:$0xff]   ;;  %v1639_v46 = vld [vmem:[%s2279_s1 + $0x328] ss:$16 sps:$4 sm:$0xff]   ;;  %p1689_p3 = pnand %p1688_p2, %p1682_p13 }
  0x3b   : > { %1042 = vmatpush1.bf16.msra.mxu0 %v1553_v49  ;;  %1124 = vmatpush1.bf16.msra.mxu1 %v1554_v50  ;;  %v1642_v49 = vld [vmem:[%s2279_s1 + $0x340] ss:$16 sps:$4 sm:$0xff]   ;;  %v1645_v50 = vld [vmem:[%s2279_s1 + $0x348] ss:$16 sps:$4 sm:$0xff]  }
  0x3c   : > { %1043 = vmatprep.subr.bf16.mxu0 %v1555_v51  ;;  %1125 = vmatprep.subr.bf16.mxu1 %v1557_v52  ;;  %v1650_v51 = vld [vmem:[%s2279_s1 + $0x364] ss:$16 sps:$4 sm:$0xff]   ;;  %v1653_v52 = vld [vmem:[%s2279_s1 + $0x36c] ss:$16 sps:$4 sm:$0xff]  }
  0x3f   : > { %1044 = vmatpush1.bf16.msra.mxu0 %v1559_v53  ;;  %1126 = vmatpush1.bf16.msra.mxu1 %v1560_v54  ;;  %v1648_v53 = vld [vmem:[%s2279_s1 + $0x360] ss:$16 sps:$4 sm:$0xff]   ;;  %v1651_v54 = vld [vmem:[%s2279_s1 + $0x368] ss:$16 sps:$4 sm:$0xff]  }
  0x40   : > { %1045 = vmatprep.subr.bf16.mxu0 %v1561_v55  ;;  %1127 = vmatprep.subr.bf16.mxu1 %v1563_v56  ;;  %v1656_v55 = vld [vmem:[%s2279_s1 + $0x384] ss:$16 sps:$4 sm:$0xff]   ;;  %v1659_v56 = vld [vmem:[%s2279_s1 + $0x38c] ss:$16 sps:$4 sm:$0xff]  }
  0x43   : > { %1046 = vmatpush1.bf16.msra.mxu0 %v1565_v57  ;;  %1128 = vmatpush1.bf16.msra.mxu1 %v1566_v58  ;;  %v1654_v57 = vld [vmem:[%s2279_s1 + $0x380] ss:$16 sps:$4 sm:$0xff]   ;;  %v1657_v58 = vld [vmem:[%s2279_s1 + $0x388] ss:$16 sps:$4 sm:$0xff]  }
  0x44   : > { %1047 = vmatprep.subr.bf16.mxu0 %v1567_v59  ;;  %1129 = vmatprep.subr.bf16.mxu1 %v1569_v60  ;;  %v1662_v59 = vld [vmem:[%s2279_s1 + $0x3a4] ss:$16 sps:$4 sm:$0xff]   ;;  %v1665_v60 = vld [vmem:[%s2279_s1 + $0x3ac] ss:$16 sps:$4 sm:$0xff]  }
  0x47   : > { %1048 = vmatpush1.bf16.msra.mxu0 %v1571_v61  ;;  %1130 = vmatpush1.bf16.msra.mxu1 %v1572_v62  ;;  %v1660_v61 = vld [vmem:[%s2279_s1 + $0x3a0] ss:$16 sps:$4 sm:$0xff]   ;;  %v1663_v62 = vld [vmem:[%s2279_s1 + $0x3a8] ss:$16 sps:$4 sm:$0xff]  }
  0x48   : > { %1049 = vmatprep.subr.bf16.mxu0 %v1573_v63  ;;  %1131 = vmatprep.subr.bf16.mxu1 %v1575_v0  ;;  %v1668_v63 = vld [vmem:[%s2279_s1 + $0x3c4] ss:$16 sps:$4 sm:$0xff]   ;;  %v1671_v0 = vld [vmem:[%s2279_s1 + $0x3cc] ss:$16 sps:$4 sm:$0xff]  }
  0x4b   : > { %1050 = vmatpush1.bf16.msra.mxu0 %v1577_v1  ;;  %1132 = vmatpush1.bf16.msra.mxu1 %v1578_v2  ;;  %v1666_v1 = vld [vmem:[%s2279_s1 + $0x3c0] ss:$16 sps:$4 sm:$0xff]   ;;  %v1669_v2 = vld [vmem:[%s2279_s1 + $0x3c8] ss:$16 sps:$4 sm:$0xff]  }
  0x4c   : > { %1060 = vmatprep.subr.bf16.mxu0 %v1584_v3  ;;  %1142 = vmatprep.subr.bf16.mxu1 %v1587_v4  ;;  %v1674_v3 = vld [vmem:[%s2279_s1 + $0x3e4] ss:$16 sps:$4 sm:$0xff]   ;;  %v1677_v4 = vld [vmem:[%s2279_s1 + $0x3ec] ss:$16 sps:$4 sm:$0xff]  }
  0x4e   : > { %1052 = vmatmul.mubr.bf16.vlgmr.msra.gmra.mrb[0].mxu0 %v1291_v6  ;;  %1134 = vmatmul.mubr.bf16.vlgmr.msra.gmra.mrb[0].mxu1 %v1291_v6  ;;  %v1672_v6 = vld [vmem:[%s2279_s1 + $0x3e0] ss:$16 sps:$4 sm:$0xff]  }
  0x4f   : > { %1061 = vmatpush1.bf16.msra.mxu0 %v1582_v7  ;;  %1143 = vmatpush1.bf16.msra.mxu1 %v1585_v8  ;;  %v1675_v7 = vld [vmem:[%s2279_s1 + $0x3e8] ss:$16 sps:$4 sm:$0xff]   ;;  %v1293_v8 = vcombine.low %v2028_v5, %v2028_v5 }
  0x50   : > { %1062 = vmatprep.subr.bf16.mxu0 %v1590_v9  ;;  %1144 = vmatprep.subr.bf16.mxu1 %v1593_v10  ;;  %v345_v9 = vlaneseq }
  0x51   : > { %1092 = vmatprep.mubr.bf16.mxu0 %v1294_v11  ;;  %1174 = vmatprep.mubr.bf16.mxu1 %v1294_v11 }
  0x52   : > { %v346_v10 = vshrl.u32 %v345_v9, 7 }
  0x53   : > { %1063 = vmatpush1.bf16.msra.mxu0 %v1588_v12  ;;  %1145 = vmatpush1.bf16.msra.mxu1 %v1591_v13  ;;  %v343_v13 = vld [vmem:[%s2280_s2] sm:$0xf] }
  0x54   : > { %1064 = vmatprep.subr.bf16.mxu0 %v1596_v14  ;;  %1146 = vmatprep.subr.bf16.mxu1 %v1599_v15  ;;  %v347_v11 = vsub.s32 0, %v346_v10  ;;  %v355_v12 = vsub.s32 2, %v346_v10  ;;  %v351_v14 = vsub.s32 1, %v346_v10  ;;  %v359_v15 = vsub.s32 3, %v346_v10 }
  0x56   : > { %v356_v5 = vrot.slane %v343_v13, %v355_v12 }
  0x57   : > { %1065 = vmatpush1.bf16.msra.mxu0 %v1594_v16  ;;  %1147 = vmatpush1.bf16.msra.mxu1 %v1597_v17  ;;  %v348_v16 = vrot.slane %v343_v13, %v347_v11  ;;  %v352_v17 = vrot.slane %v343_v13, %v351_v14 }
  0x58   : > { %1066 = vmatprep.subr.bf16.mxu0 %v1602_v18  ;;  %1148 = vmatprep.subr.bf16.mxu1 %v1605_v19  ;;  %v360_v18 = vrot.slane %v343_v13, %v359_v15 }
  0x5b   : > { %1067 = vmatpush1.bf16.msra.mxu0 %v1600_v20  ;;  %1149 = vmatpush1.bf16.msra.mxu1 %v1603_v21 }
  0x5c   : > { %1068 = vmatprep.subr.bf16.mxu0 %v1608_v22  ;;  %1150 = vmatprep.subr.bf16.mxu1 %v1611_v23 }
  0x5f   : > { %1069 = vmatpush1.bf16.msra.mxu0 %v1606_v24  ;;  %1151 = vmatpush1.bf16.msra.mxu1 %v1609_v25 }
  0x60   : > { %1070 = vmatprep.subr.bf16.mxu0 %v1614_v26  ;;  %1152 = vmatprep.subr.bf16.mxu1 %v1617_v27 }
  0x63   : > { %1071 = vmatpush1.bf16.msra.mxu0 %v1612_v28  ;;  %1153 = vmatpush1.bf16.msra.mxu1 %v1615_v29 }
  0x64   : > { %1072 = vmatprep.subr.bf16.mxu0 %v1620_v30  ;;  %1154 = vmatprep.subr.bf16.mxu1 %v1623_v31 }
  0x67   : > { %1073 = vmatpush1.bf16.msra.mxu0 %v1618_v33  ;;  %1155 = vmatpush1.bf16.msra.mxu1 %v1621_v34 }
  0x68   : > { %1074 = vmatprep.subr.bf16.mxu0 %v1626_v35  ;;  %1156 = vmatprep.subr.bf16.mxu1 %v1629_v36 }
  0x6b   : > { %1075 = vmatpush1.bf16.msra.mxu0 %v1624_v37  ;;  %1157 = vmatpush1.bf16.msra.mxu1 %v1627_v38 }
  0x6c   : > { %1076 = vmatprep.subr.bf16.mxu0 %v1632_v39  ;;  %1158 = vmatprep.subr.bf16.mxu1 %v1635_v40 }
  0x6f   : > { %1077 = vmatpush1.bf16.msra.mxu0 %v1630_v41  ;;  %1159 = vmatpush1.bf16.msra.mxu1 %v1633_v42 }
  0x70   : > { %1078 = vmatprep.subr.bf16.mxu0 %v1638_v43  ;;  %1160 = vmatprep.subr.bf16.mxu1 %v1641_v44 }
  0x73   : > { %1079 = vmatpush1.bf16.msra.mxu0 %v1636_v45  ;;  %1161 = vmatpush1.bf16.msra.mxu1 %v1639_v46 }
  0x74   : > { %1080 = vmatprep.subr.bf16.mxu0 %v1644_v47  ;;  %1162 = vmatprep.subr.bf16.mxu1 %v1647_v48 }
  0x77   : > { %1081 = vmatpush1.bf16.msra.mxu0 %v1642_v49  ;;  %1163 = vmatpush1.bf16.msra.mxu1 %v1645_v50 }
  0x78   : > { %1082 = vmatprep.subr.bf16.mxu0 %v1650_v51  ;;  %1164 = vmatprep.subr.bf16.mxu1 %v1653_v52 }
  0x7b   : > { %1083 = vmatpush1.bf16.msra.mxu0 %v1648_v53  ;;  %1165 = vmatpush1.bf16.msra.mxu1 %v1651_v54 }
  0x7c   : > { %1084 = vmatprep.subr.bf16.mxu0 %v1656_v55  ;;  %1166 = vmatprep.subr.bf16.mxu1 %v1659_v56 }
  0x7f   : > { %1085 = vmatpush1.bf16.msra.mxu0 %v1654_v57  ;;  %1167 = vmatpush1.bf16.msra.mxu1 %v1657_v58 }
  0x80   : > { %1086 = vmatprep.subr.bf16.mxu0 %v1662_v59  ;;  %1168 = vmatprep.subr.bf16.mxu1 %v1665_v60 }
  0x83   : > { %1087 = vmatpush1.bf16.msra.mxu0 %v1660_v61  ;;  %1169 = vmatpush1.bf16.msra.mxu1 %v1663_v62 }
  0x84   : > { %1088 = vmatprep.subr.bf16.mxu0 %v1668_v63  ;;  %1170 = vmatprep.subr.bf16.mxu1 %v1671_v0 }
  0x87   : > { %1089 = vmatpush1.bf16.msra.mxu0 %v1666_v1  ;;  %1171 = vmatpush1.bf16.msra.mxu1 %v1669_v2 }
  0x88   : > { %1090 = vmatprep.subr.bf16.mxu0 %v1674_v3  ;;  %1172 = vmatprep.subr.bf16.mxu1 %v1677_v4 }
  0x8b   : > { %1091 = vmatpush1.bf16.msra.mxu0 %v1672_v6  ;;  %1173 = vmatpush1.bf16.msra.mxu1 %v1675_v7 }
  0x8e   : > { %1093 = vmatmul.mubr.bf16.vlgmr.msra.gmra.mrb[0].mxu0 %v1293_v8  ;;  %1175 = vmatmul.mubr.bf16.vlgmr.msra.gmra.mrb[0].mxu1 %v1293_v8 }
  0xad   : > { %v1187_v19 = vpop.permute.xlu0 %1186 }
 0x161   : > { %v1094_v20 = vpop.f32.mrb[0].mxu0  ;;  %v1176_v21 = vpop.f32.mrb[0].mxu1 }
 0x162   : > { %v1430_v22 = vadd.f32 %v1094_v20, %v348_v16  ;;  %v1432_v23 = vadd.f32 %v1176_v21, %v356_v5  ;;  %v1096_v24 = vpop.f32.mrb[1].mxu0  ;;  %v1178_v25 = vpop.f32.mrb[1].mxu1 }
 0x163   : > { %v1431_v26 = vadd.f32 %v1096_v24, %v352_v17  ;;  %v1433_v27 = vadd.f32 %v1178_v25, %v360_v18  ;;  %v1098_v28 = vpop.f32.mrb[2].mxu0  ;;  %v1180_v29 = vpop.f32.mrb[2].mxu1 }
 0x164   : > { %v1189_v30 = vmul.f32 %v1430_v22, %v1187_v19  ;;  %v1191_v31 = vmul.f32 %v1432_v23, %v1187_v19  ;;  %v1099_v32 = vpop.f32.mrb[3].mxu0  ;;  %v1181_v33 = vpop.f32.mrb[3].mxu1 }
 0x165   : > { %v1190_v34 = vmul.f32 %v1431_v26, %v1187_v19  ;;  %v1192_v35 = vmul.f32 %v1433_v27, %v1187_v19 }
 0x166   : > { %1193 = vst [vmem:[%s203_s6] sm:$0xff] %v1189_v30  ;;  %1195 = vst [vmem:[%s203_s6 + $0x10] sm:$0xff] %v1191_v31 }
 0x167   : > { %1194 = vst [vmem:[%s203_s6 + $0x8] sm:$0xff] %v1190_v34  ;;  %1196 = vst [vmem:[%s203_s6 + $0x18] sm:$0xff] %v1192_v35 }
 0x168   : > { %1692 = shalt.err (!%p1689_p3)
}
 0x169   : > { %s1693_s22 = scalar_lea.hbm %s2234_s12, 512  ;;  %s1697_s28 = scalar_lea.hbm %s2282_s4, 1024 }
 0x16a   : > { %p1694_p4 = scmp.ne.s32.totalorder %s2234_s12, %s1693_s22  ;;  %p1698_p9 = scmp.lt.u32.totalorder %s2234_s12, %s2282_s4 }
 0x16b   : > { %p1699_p10 = scmp.lt.u32.totalorder %s1697_s28, %s1693_s22  ;;  %p1701_p12 = scmp.lt.u32.totalorder %s1693_s22, %s2234_s12 }
 0x16c   : > { %p1695_p7 = pnand %p1694_p4, %p1808_p5 }
 0x16d   : > { %p1700_p11 = por %p1699_p10, %p1698_p9 }
 0x16e   : > { %p1696_p8 = pneg %p1695_p7 }
 0x16f   : > { %p1702_p13 = por %p1701_p12, %p1700_p11 }
 0x171   : > { %p1703_p0 = pnand %p1702_p13, %p1696_p8 }
 0x173   : > { %1706 = shalt.err (!%p1703_p0)
}
 0x174   : > { %1442 = dma.vmem_to_hbm [thread:$0]  (%p1808_p5), %s2236_s8, 512, %s2234_s12, %s1198_s19  }
 0x175 PF: > { %p1448_p1 = scmp.ge.s32.totalorder %s1741_s18, 2  ;;  %s1224_s7 = sand.u32 1, %s1729_s15  }
 0x176   : > { %s1225_s5 = scalar_lea.sflag [#allocation3], %s1224_s7 }
 0x177   : > { %p1445_p2 = pnand %p1448_p1, %p1812_p6 }
 0x179   : > { %1724 = dma.done.wait (!%p1445_p2), %s1225_s5, 512  }
 0x17a   : > { %1726 = vsyncadd (!%p1445_p2), %s1225_s5, 4294966784  ;;  %p14_p3 = scmp.ge.s32.totalorder %s1795_s21, 4   ;;  %s2285_s15 = smov %s1733_s16 }
 0x17b   : > { %s2286_s16 = smov %s1737_s17  ;;  %s2287_s17 = smov %s1806_s24 }
 0x17c   : > { %s2288_s18 = smov %s1795_s21  ;;  %16 = sbr.rel (!%p14_p3) target bundleno = 3 (0x3), region = 74 }
 0x183   :  { %1230 = vsyncpa [#allocation3], 1 }
 0x184   :  { %1232 = vsyncpa [#allocation3 + $0x1], 1 }

</bundles_post_ra>
